<compile_context>
chip_gen: v5e
topology: v5e:2x2
jax: 0.10.0
libtpu: 0.0.40
codegen_flags: <defaults>
</compile_context>

<pallas_src>
import functools

import jax
import jax.numpy as jnp
from jax.experimental import pallas as pl
from jax.experimental.pallas import tpu as pltpu

_LANE = 128
_CompilerParams = getattr(pltpu, "CompilerParams", None) or getattr(pltpu, "TPUCompilerParams")


def _round_up(x, m):
    return ((x + m - 1) // m) * m


@functools.lru_cache(maxsize=1)
def _bf16_eup_supported():
    # bf16 transcendentals only on v6e / v7x (not v5e and older).
    try:
        kind = jax.devices()[0].device_kind.lower()
    except Exception:
        return False
    return ("v6" in kind) or ("v7" in kind)


def _actor_kernel(s_ref, w1_ref, b1_ref, w2_ref, b2_ref, w3_ref, b3_ref, o_ref,
                  *, max_action: float, bf16_tanh: bool):
    # Fused forward: 3 matmuls (bf16 operands, f32 accumulation) + tanh activations.
    x = s_ref[...]                                                        # (bm, sd) bf16
    h = jnp.dot(x, w1_ref[...], preferred_element_type=jnp.float32) + b1_ref[...]
    h = jnp.tanh(h.astype(jnp.bfloat16)) if bf16_tanh else jnp.tanh(h).astype(jnp.bfloat16)
    h = jnp.dot(h, w2_ref[...], preferred_element_type=jnp.float32) + b2_ref[...]
    h = jnp.tanh(h.astype(jnp.bfloat16)) if bf16_tanh else jnp.tanh(h).astype(jnp.bfloat16)
    a = jnp.dot(h, w3_ref[...], preferred_element_type=jnp.float32) + b3_ref[...]
    o_ref[...] = (jnp.tanh(a) * max_action).astype(o_ref.dtype)          # (bm, ad) f32


def prepare_actor_params(w1, b1, w2, b2, w3, b3):
    """One-time weight prep, hoisted out of the per-call path.

    w*: (in_features, out_features) so the kernel computes x @ W + b (transpose of
    PyTorch's (out, in) storage; same math). Only net_width is lane-padded with zeros
    (zero cols + zero bias -> tanh(0)=0 -> padded lanes never affect real outputs).
    Weights cast to bf16 once; biases kept f32.
    """
    state_dim, net_width = w1.shape
    action_dim = w3.shape[1]
    nw_p = _round_up(net_width, _LANE)
    pad = nw_p - net_width
    w1_p = jnp.pad(w1, ((0, 0), (0, pad))).astype(jnp.bfloat16)
    w2_p = jnp.pad(w2, ((0, pad), (0, pad))).astype(jnp.bfloat16)
    w3_p = jnp.pad(w3, ((0, pad), (0, 0))).astype(jnp.bfloat16)
    b1_p = jnp.pad(b1, (0, pad)).reshape(1, nw_p).astype(jnp.float32)
    b2_p = jnp.pad(b2, (0, pad)).reshape(1, nw_p).astype(jnp.float32)
    b3_p = b3.reshape(1, action_dim).astype(jnp.float32)
    return (w1_p, b1_p, w2_p, b2_p, w3_p, b3_p)


def actor_forward(state, params, max_action, *, bm=None, bf16_tanh=None):
    """state: (B, state_dim) -> (B, action_dim) f32. `params` from prepare_actor_params."""
    w1_p, b1_p, w2_p, b2_p, w3_p, b3_p = params
    B, sd = state.shape
    nw_p = w1_p.shape[1]
    ad = w3_p.shape[1]

    if bf16_tanh is None:
        bf16_tanh = _bf16_eup_supported()

    # Batch tile: one step for tiny batches, else >=2 parallel steps (v7x has 2 TCs),
    # capped at 512 rows (amortizes per-step overhead, near HBM roofline).
    if bm is None:
        bm = _round_up(B, 8) if B <= 16 else min(512, _round_up(pl.cdiv(B, 2), 8))
    bm = max(8, _round_up(bm, 8))
    grid = (pl.cdiv(B, bm),)

    # Only per-call prep: bf16 state (matmul operand is bf16 anyway; halves state DMA).
    x = state.astype(jnp.bfloat16)

    # Single-buffer the grid-constant weight/bias blocks when double-buffering them
    # would waste meaningful VMEM (wide actors); tiny nets keep the plain spec.
    w_bytes = 2 * (sd * nw_p + nw_p * nw_p + nw_p * ad) + 4 * (2 * nw_p + ad)
    single_buffer_weights = w_bytes > (2 << 20)

    def _wspec(shape):
        if single_buffer_weights:
            return pl.BlockSpec(shape, lambda i: (0, 0), pipeline_mode=pl.Buffered(1))
        return pl.BlockSpec(shape, lambda i: (0, 0))

    # VMEM budget: weights (+bufs) + double-buffered state/out tiles + f32 intermediates.
    # Only raise the scoped limit when the 32 MiB default would not fit; keep headroom
    # below physical per-core VMEM (64 MiB on v7x, 128 MiB on v5e/v6e).
    wb_bufs = 1 if single_buffer_weights else 2
    est = (wb_bufs * w_bytes
           + 2 * (bm * sd * 2 + bm * ad * 4)
           + 3 * bm * nw_p * 4)
    vmem_limit = None
    if est > 28 * 1024 * 1024:
        try:
            cap = int(pltpu.get_tpu_info().vmem_capacity_bytes * 0.8)
        except Exception:
            cap = 48 * 1024 * 1024
        vmem_limit = max(32 * 1024 * 1024, min(cap, int(est * 1.25)))

    kernel = functools.partial(_actor_kernel, max_action=float(max_action),
                               bf16_tanh=bool(bf16_tanh))

    return pl.pallas_call(
        kernel,
        out_shape=jax.ShapeDtypeStruct((B, ad), jnp.float32),
        grid_spec=pltpu.PrefetchScalarGridSpec(
            num_scalar_prefetch=0,
            grid=grid,
            in_specs=[
                # batch tile of the state (last dim = full state_dim, unpadded)
                pl.BlockSpec((bm, sd), lambda i: (i, 0)),
                # weights / biases, resident for every batch tile
                _wspec((sd, nw_p)),   # w1
                _wspec((1, nw_p)),    # b1
                _wspec((nw_p, nw_p)),  # w2
                _wspec((1, nw_p)),    # b2
                _wspec((nw_p, ad)),   # w3 (last dim = full action_dim, unpadded)
                _wspec((1, ad)),      # b3
            ],
            out_specs=pl.BlockSpec((bm, ad), lambda i: (i, 0)),
        ),
        compiler_params=_CompilerParams(
            dimension_semantics=("parallel",),
            vmem_limit_bytes=vmem_limit),
    )(x, w1_p, b1_p, w2_p, b2_p, w3_p, b3_p)


def _init_linear(key, fan_in, fan_out):
    # Deterministic init mimicking PyTorch nn.Linear default (uniform +-1/sqrt(fan_in)).
    kw, kb = jax.random.split(key)
    bound = 1.0 / jnp.sqrt(fan_in)
    w = jax.random.uniform(kw, (fan_in, fan_out), jnp.float32, -bound, bound)
    b = jax.random.uniform(kb, (fan_out,), jnp.float32, -bound, bound)
    return w, b


if __name__ == "__main__":
    # Small shapes consistent with the module.
    B, state_dim, action_dim, net_width = 8, 16, 4, 32
    max_action = 2.0

    key = jax.random.PRNGKey(0)
    k_s, k1, k2, k3 = jax.random.split(key, 4)

    state = jax.random.normal(k_s, (B, state_dim), jnp.float32)
    w1, b1 = _init_linear(k1, state_dim, net_width)
    w2, b2 = _init_linear(k2, net_width, net_width)
    w3, b3 = _init_linear(k3, net_width, action_dim)

    params = prepare_actor_params(w1, b1, w2, b2, w3, b3)   # one-time weight prep
    out = actor_forward(state, params, max_action)
    out = jax.block_until_ready(out)

    # Pure-JAX f32 reference (kernel uses bf16 matmul operands -> loosened tolerance).
    ref = jnp.tanh(state @ w1 + b1)
    ref = jnp.tanh(ref @ w2 + b2)
    ref = jnp.tanh(ref @ w3 + b3) * max_action
    assert out.shape == (B, action_dim)
    err = float(jnp.max(jnp.abs(out - ref)))
    assert jnp.allclose(out, ref, atol=3e-2, rtol=3e-2), err

    print("KERNEL_OK")
</pallas_src>

<mosaic_0001>
module attributes {stable_mosaic.version = 11 : i64} {
  func.func @_actor_kernel(%arg0: i32, %arg1: memref<8x16xbf16, #tpu.memory_space<vmem>>, %arg2: memref<16x128xbf16, #tpu.memory_space<vmem>>, %arg3: memref<1x128xf32, #tpu.memory_space<vmem>>, %arg4: memref<128x128xbf16, #tpu.memory_space<vmem>>, %arg5: memref<1x128xf32, #tpu.memory_space<vmem>>, %arg6: memref<128x4xbf16, #tpu.memory_space<vmem>>, %arg7: memref<1x4xf32, #tpu.memory_space<vmem>>, %arg8: memref<8x4xf32, #tpu.memory_space<vmem>>) attributes {dimension_semantics = [#tpu.dimension_semantics<parallel>], iteration_bounds = array<i64: 1>, scalar_prefetch = 0 : i64, scratch_operands = 0 : i64, tpu.core_type = #tpu.core_type<tc>, window_params = [{transform_indices = @transform_0, window_bounds = array<i64: 8, 16>}, {pipeline_mode = #tpu.pipeline_mode<synchronous>, transform_indices = @transform_1, window_bounds = array<i64: 16, 128>}, {pipeline_mode = #tpu.pipeline_mode<synchronous>, transform_indices = @transform_2, window_bounds = array<i64: 1, 128>}, {pipeline_mode = #tpu.pipeline_mode<synchronous>, transform_indices = @transform_3, window_bounds = array<i64: 128, 128>}, {pipeline_mode = #tpu.pipeline_mode<synchronous>, transform_indices = @transform_4, window_bounds = array<i64: 1, 128>}, {pipeline_mode = #tpu.pipeline_mode<synchronous>, transform_indices = @transform_5, window_bounds = array<i64: 128, 4>}, {pipeline_mode = #tpu.pipeline_mode<synchronous>, transform_indices = @transform_6, window_bounds = array<i64: 1, 4>}, {transform_indices = @transform_7, window_bounds = array<i64: 8, 4>}]} {
    %c0 = arith.constant 0 : index
    %c0_0 = arith.constant 0 : index
    %0 = vector.load %arg1[%c0, %c0_0] : memref<8x16xbf16, #tpu.memory_space<vmem>>, vector<8x16xbf16>
    %c0_1 = arith.constant 0 : index
    %c0_2 = arith.constant 0 : index
    %1 = vector.load %arg2[%c0_1, %c0_2] : memref<16x128xbf16, #tpu.memory_space<vmem>>, vector<16x128xbf16>
    %cst = arith.constant dense<0.000000e+00> : vector<8x128xf32>
    %2 = tpu.matmul %0, %1, %cst {dimension_numbers = #tpu.dot_dimension_numbers<[1], [0], [0], [1], [0, 0, 1, 1], [], []>} : vector<8x16xbf16>, vector<16x128xbf16>, vector<8x128xf32> -> vector<8x128xf32>
    %c0_3 = arith.constant 0 : index
    %c0_4 = arith.constant 0 : index
    %3 = vector.load %arg3[%c0_3, %c0_4] : memref<1x128xf32, #tpu.memory_space<vmem>>, vector<1x128xf32>
    %4 = vector.broadcast %3 : vector<1x128xf32> to vector<8x128xf32>
    %5 = arith.addf %2, %4 : vector<8x128xf32>
    %6 = math.tanh %5 : vector<8x128xf32>
    %7 = arith.truncf %6 : vector<8x128xf32> to vector<8x128xbf16>
    %c0_5 = arith.constant 0 : index
    %c0_6 = arith.constant 0 : index
    %8 = vector.load %arg4[%c0_5, %c0_6] : memref<128x128xbf16, #tpu.memory_space<vmem>>, vector<128x128xbf16>
    %cst_7 = arith.constant dense<0.000000e+00> : vector<8x128xf32>
    %9 = tpu.matmul %7, %8, %cst_7 {dimension_numbers = #tpu.dot_dimension_numbers<[1], [0], [0], [1], [0, 0, 1, 1], [], []>} : vector<8x128xbf16>, vector<128x128xbf16>, vector<8x128xf32> -> vector<8x128xf32>
    %c0_8 = arith.constant 0 : index
    %c0_9 = arith.constant 0 : index
    %10 = vector.load %arg5[%c0_8, %c0_9] : memref<1x128xf32, #tpu.memory_space<vmem>>, vector<1x128xf32>
    %11 = vector.broadcast %10 : vector<1x128xf32> to vector<8x128xf32>
    %12 = arith.addf %9, %11 : vector<8x128xf32>
    %13 = math.tanh %12 : vector<8x128xf32>
    %14 = arith.truncf %13 : vector<8x128xf32> to vector<8x128xbf16>
    %c0_10 = arith.constant 0 : index
    %c0_11 = arith.constant 0 : index
    %15 = vector.load %arg6[%c0_10, %c0_11] : memref<128x4xbf16, #tpu.memory_space<vmem>>, vector<128x4xbf16>
    %cst_12 = arith.constant dense<0.000000e+00> : vector<8x4xf32>
    %16 = tpu.matmul %14, %15, %cst_12 {dimension_numbers = #tpu.dot_dimension_numbers<[1], [0], [0], [1], [0, 0, 1, 1], [], []>} : vector<8x128xbf16>, vector<128x4xbf16>, vector<8x4xf32> -> vector<8x4xf32>
    %c0_13 = arith.constant 0 : index
    %c0_14 = arith.constant 0 : index
    %17 = vector.load %arg7[%c0_13, %c0_14] : memref<1x4xf32, #tpu.memory_space<vmem>>, vector<1x4xf32>
    %18 = vector.broadcast %17 : vector<1x4xf32> to vector<8x4xf32>
    %19 = arith.addf %16, %18 : vector<8x4xf32>
    %20 = math.tanh %19 : vector<8x4xf32>
    %cst_15 = arith.constant 2.000000e+00 : f32
    %21 = vector.broadcast %cst_15 : f32 to vector<8x4xf32>
    %22 = arith.mulf %20, %21 : vector<8x4xf32>
    %c0_16 = arith.constant 0 : index
    %c0_17 = arith.constant 0 : index
    %23 = vector.load %arg8[%c0_16, %c0_17] : memref<8x4xf32, #tpu.memory_space<vmem>>, vector<8x4xf32>
    tpu.vector_store %arg8[%c0_16, %c0_17], %22 {strides = array<i32>} : memref<8x4xf32, #tpu.memory_space<vmem>>, vector<8x4xf32>,
    return
  }
  func.func @transform_0(%arg0: i32) -> (i32, i32) {
    %c0_i32 = arith.constant 0 : i32
    %c0_i32_0 = arith.constant 0 : i32
    return %arg0, %c0_i32 : i32, i32
  }
  func.func @transform_1(%arg0: i32) -> (i32, i32) {
    %c0_i32 = arith.constant 0 : i32
    %c0_i32_0 = arith.constant 0 : i32
    %c0_i32_1 = arith.constant 0 : i32
    return %c0_i32, %c0_i32_0 : i32, i32
  }
  func.func @transform_2(%arg0: i32) -> (i32, i32) {
    %c0_i32 = arith.constant 0 : i32
    %c0_i32_0 = arith.constant 0 : i32
    %c0_i32_1 = arith.constant 0 : i32
    return %c0_i32, %c0_i32_0 : i32, i32
  }
  func.func @transform_3(%arg0: i32) -> (i32, i32) {
    %c0_i32 = arith.constant 0 : i32
    %c0_i32_0 = arith.constant 0 : i32
    %c0_i32_1 = arith.constant 0 : i32
    return %c0_i32, %c0_i32_0 : i32, i32
  }
  func.func @transform_4(%arg0: i32) -> (i32, i32) {
    %c0_i32 = arith.constant 0 : i32
    %c0_i32_0 = arith.constant 0 : i32
    %c0_i32_1 = arith.constant 0 : i32
    return %c0_i32, %c0_i32_0 : i32, i32
  }
  func.func @transform_5(%arg0: i32) -> (i32, i32) {
    %c0_i32 = arith.constant 0 : i32
    %c0_i32_0 = arith.constant 0 : i32
    %c0_i32_1 = arith.constant 0 : i32
    return %c0_i32, %c0_i32_0 : i32, i32
  }
  func.func @transform_6(%arg0: i32) -> (i32, i32) {
    %c0_i32 = arith.constant 0 : i32
    %c0_i32_0 = arith.constant 0 : i32
    %c0_i32_1 = arith.constant 0 : i32
    return %c0_i32, %c0_i32_0 : i32, i32
  }
  func.func @transform_7(%arg0: i32) -> (i32, i32) {
    %c0_i32 = arith.constant 0 : i32
    %c0_i32_0 = arith.constant 0 : i32
    return %arg0, %c0_i32 : i32, i32
  }
}

</mosaic_0001>

<bundles_post_ra>
// kernel: tpu_custom_call.1
= control target key start
LH: loop header
LB: loop body
LE: loop exit
PB: predicated region body
PF: predicated region fallthrough
CT: control target
= control target key end

     0   :  { %12 = vsyncpa [#allocation3], 0  ;;  %s524_s0 = inlined_call_operand.hbm [shape: bf16[8,16], index: 0, kind: input, shape index: {}]   ;;  %s525_s1 = inlined_call_operand.hbm [shape: bf16[16,128], index: 1, kind: input, shape index: {}]   ;;  %s526_s2 = inlined_call_operand.vmem [shape: f32[1,128], index: 2, kind: input, shape index: {}]   ;;  %s527_s3 = inlined_call_operand.vmem [shape: bf16[128,128], index: 3, kind: input, shape index: {}]   ;;  %s528_s4 = inlined_call_operand.vmem [shape: f32[1,128], index: 4, kind: input, shape index: {}]   ;;  %s529_s5 = inlined_call_operand.vmem [shape: bf16[128,4], index: 5, kind: input, shape index: {}]   ;;  %s530_s6 = inlined_call_operand.vmem [shape: f32[1,4], index: 6, kind: input, shape index: {}]   ;;  %s531_s7 = inlined_call_operand.vmem [shape: f32[8,4], index: 7, kind: output, shape index: {}]  }
   0x1   :  { %s19_s26 = sshll.u32 %s524_s0, 4  ;;  %s20_s26 = int_to_ptr.hbm [resolvable:$true] %s19_s26 }
   0x2   :  { %13 = vsyncpa [#allocation5], 0  ;;  %s414_s27 = smov [#allocation2]   ;;  %s29_s8 = sshll.u32 %s525_s1, 4  ;;  %s30_s8 = int_to_ptr.hbm [resolvable:$true] %s29_s8 }
   0x3   :  { %s21_s28 = sshll.u32 %s414_s27, 4  ;;  %s415_s9 = smov [#allocation4]   ;;  %s22_s28 = int_to_ptr.vmem [resolvable:$true] %s21_s28 }
   0x4   :  { %24 = dma.hbm_to_vmem [thread:$0]  %s20_s26, 64, %s22_s28, [#allocation3]  }
   0x5   :  { %s31_s10 = sshll.u32 %s415_s9, 4  ;;  %s416_s11 = smov 64   ;;  %s32_s10 = int_to_ptr.vmem [resolvable:$true] %s31_s10 }
   0x6   :  { %s417_s12 = smov 4  }
   0x7   :  { %37 = dma.hbm_to_vmem [thread:$0]  %s30_s8, 128, %s32_s10, [#allocation5], %s416_s11, %s416_s11, %s417_s12  }
   0x8   :  { %410 = dma.done.wait [#allocation3], 64  }
   0x9   :  { %411 = vsyncadd [#allocation3], 4294967232 }
   0xa   :  { %412 = dma.done.wait [#allocation5], 128  }
   0xb   :  { %413 = vsyncadd [#allocation5], 4294967168  ;;  %v332_v0 = vld [vmem:[#allocation4] sm:$0xff]  ;;  %v340_v1 = vld [vmem:[%s527_s3 + $0x38] sm:$0xff]  ;;  %vm70_vm0 = vcmask 130048   ;;  %vm255_vm1 = vcmask 31744  }
   0xc   :  { %81 = vmatpush.bf16.msra.mxu0 %v332_v0  ;;  %v57_v2 = vld [vmem:[#allocation2] sm:$0xf]  ;;  %157 = vmatpush.bf16.msra.mxu1 %v340_v1  ;;  %v339_v3 = vld [vmem:[%s527_s3 + $0x30] sm:$0xff]  ;;  %v338_v4 = vld [vmem:[%s527_s3 + $0x28] sm:$0xff] }
   0xd   :  { %v337_v5 = vld [vmem:[%s527_s3 + $0x20] sm:$0xff]  ;;  %v336_v6 = vld [vmem:[%s527_s3 + $0x18] sm:$0xff]  ;;  %v335_v7 = vld [vmem:[%s527_s3 + $0x10] sm:$0xff] }
   0xe   :  { %v334_v8 = vld [vmem:[%s527_s3 + $0x8] sm:$0xff]  ;;  %v333_v9 = vld [vmem:[%s527_s3] sm:$0xff]  ;;  %v348_v10 = vld [vmem:[%s529_s5 + $0x38] sm:$0xff] }
   0xf   :  { %267 = vmatmul.msk.bf16.vlgmr.msra.gmra.mxu0 %vm70_vm0, %v57_v2  ;;  %240 = vmatpush.bf16.msra.mxu2 %v348_v10  ;;  %v347_v11 = vld [vmem:[%s529_s5 + $0x30] sm:$0xff]  ;;  %v346_v12 = vld [vmem:[%s529_s5 + $0x28] sm:$0xff]  ;;  %v345_v13 = vld [vmem:[%s529_s5 + $0x20] sm:$0xff] }
  0x10   :  { %158 = vmatpush.bf16.msra.mxu1 %v339_v3  ;;  %v344_v14 = vld [vmem:[%s529_s5 + $0x18] sm:$0xff]  ;;  %v353_v15 = vld [vmem:[%s526_s2] ss:$0 sm:$0xff]  ;;  %v343_v21 = vld [vmem:[%s529_s5 + $0x10] sm:$0xff] }
  0x11   :  { %v342_v22 = vld [vmem:[%s529_s5 + $0x8] sm:$0xff]  ;;  %v341_v23 = vld [vmem:[%s529_s5] sm:$0xff] }
  0x12   :  { %v354_v24 = vld [vmem:[%s528_s4] ss:$0 sm:$0xff] }
  0x13   :  { %241 = vmatpush.bf16.msra.mxu2 %v347_v11  ;;  %v355_v30 = vld [vmem:[%s530_s6] ss:$0 sm:$0xff] }
  0x14   :  { %159 = vmatpush.bf16.msra.mxu1 %v338_v4 }
  0x17   :  { %242 = vmatpush.bf16.msra.mxu2 %v346_v12 }
  0x18   :  { %160 = vmatpush.bf16.msra.mxu1 %v337_v5 }
  0x1b   :  { %243 = vmatpush.bf16.msra.mxu2 %v345_v13 }
  0x1c   :  { %161 = vmatpush.bf16.msra.mxu1 %v336_v6 }
  0x1f   :  { %244 = vmatpush.bf16.msra.mxu2 %v344_v14 }
  0x20   :  { %162 = vmatpush.bf16.msra.mxu1 %v335_v7 }
  0x23   :  { %245 = vmatpush.bf16.msra.mxu2 %v343_v21 }
  0x24   :  { %163 = vmatpush.bf16.msra.mxu1 %v334_v8 }
  0x27   :  { %246 = vmatpush.bf16.msra.mxu2 %v342_v22 }
  0x28   :  { %164 = vmatpush.bf16.msra.mxu1 %v333_v9 }
  0x2b   :  { %247 = vmatpush.bf16.msra.mxu2 %v341_v23 }
  0x8c   :  { %v83_v16 = vpop.f32.mrf.mxu0 }
  0x8d   :  { %v84_v17 = vadd.f32 %v353_v15, %v83_v16 }
  0x8f   :  { %356 = vtanh.f32 %v84_v17 }
  0x94   :  { %v85_v18 = vpop.f32.mrf.mxu0 }
  0x95   :  { %v357_v19 = vpop.eup %356 }
  0x96   :  { %v88_v20 = vpack.c.bf16 %v357_v19, %v357_v19 }
  0x98   :  { %165 = vmatmul.bf16.vlgmr.msra.gmra.mxu1 %v88_v20 }
 0x115   :  { %v166_v25 = vpop.f32.mrf.mxu1 }
 0x116   :  { %v167_v26 = vadd.f32 %v354_v24, %v166_v25 }
 0x118   :  { %358 = vtanh.f32 %v167_v26 }
 0x11d   :  { %v168_v27 = vpop.f32.mrf.mxu1 }
 0x11e   :  { %v359_v28 = vpop.eup %358 }
 0x11f   :  { %v171_v29 = vpack.c.bf16 %v359_v28, %v359_v28 }
 0x121   :  { %248 = vmatmul.bf16.vlgmr.msra.gmra.mxu2 %v171_v29 }
 0x1a4   :  { %v249_v31 = vpop.f32.mrf.mxu2 }
 0x1a5   :  { %v250_v32 = vadd.f32 %v355_v30, %v249_v31 }
 0x1a7   :  { %360 = vtanh.f32 %v250_v32 }
 0x1ac   :  { %v251_v33 = vpop.f32.mrf.mxu2 }
 0x1ad   :  { %v361_v34 = vpop.eup %360 }
 0x1ae   :  { %v254_v35 = vmul.f32 2.0, %v361_v34 }
 0x1b0   :  { %256 = vst.msk [vmem:[%s531_s7] sm:$0xff] %vm255_vm1, %v254_v35 }
 0x1b1   :  { %261 = vsyncpa [#allocation3], 1 }
 0x1b2   :  { %262 = vsyncpa [#allocation5], 1 }

</bundles_post_ra>
